<compile_context>
chip_gen: v5e
topology: v5e:2x2
jax: 0.10.0
libtpu: 0.0.40
codegen_flags: <defaults>
</compile_context>

<pallas_src>
import functools

import jax
import jax.numpy as jnp
from jax.experimental import pallas as pl
from jax.experimental.pallas import tpu as pltpu

NPDF = 10
LANES = 128


def _round_up(n, m):
    return ((n + m - 1) // m) * m


def _recip(x):
    # EUP approx reciprocal (single vrcp, frees VALU slots) + one Newton step
    # to recover ~1e-7 relative accuracy.
    r = pl.reciprocal(x, approx=True)
    return r * (2.0 - x * r)


def _mlp_kernel(p_ref, x_ref, out_ref, *, npdf, input_dim, out_lanes):
    """p_ref: packed params (rows, 128); x_ref: (tb, input_dim); out_ref: (tb, out_lanes)."""
    in_rows = _round_up(input_dim, 8)          # 8-aligned w1 section in the slab
    mm_dtype = p_ref.dtype                     # f32 or bf16 matmul path

    x = x_ref[...].astype(mm_dtype)
    w1 = p_ref[0:input_dim, :]                 # (input_dim, 128), cols >= h1 zero
    w2 = p_ref[in_rows:in_rows + LANES, :]     # (128, 128), rows >= h1 / cols >= h2 zero
    wh = p_ref[in_rows + LANES:in_rows + 2 * LANES, :]   # fused [output | hyp] head
    rb = in_rows + 2 * LANES
    b1 = p_ref[rb + 0:rb + 1, :].astype(jnp.float32)
    b2 = p_ref[rb + 1:rb + 2, :].astype(jnp.float32)
    bh = p_ref[rb + 2:rb + 3, :].astype(jnp.float32)

    # l_1 = sigmoid(input(x)); pad lanes give sigmoid(0)=0.5 but hit zero rows
    # of w2, so they contribute nothing downstream.
    l1 = jax.nn.sigmoid(jnp.dot(x, w1, preferred_element_type=jnp.float32) + b1)
    # l_2 = sigmoid(hidden(l_1))
    l2 = jax.nn.sigmoid(
        jnp.dot(l1.astype(mm_dtype), w2, preferred_element_type=jnp.float32) + b2)
    # fused head: cols [0, npdf) = output(l_2) logits, col npdf = hyp(l_2) logit.
    head = jnp.dot(l2.astype(mm_dtype), wh, preferred_element_type=jnp.float32) + bh

    h = head[:, :out_lanes]                    # keep only the 16 real lanes
    col = jax.lax.broadcasted_iota(jnp.int32, h.shape, 1)
    is_pdf = col < npdf
    is_hyp = col == npdf

    # Single fused exp: pdf lanes get exp(h - m) (stable softmax numerator),
    # the hyp lane gets exp(-h) (for sigmoid), pad lanes get exp(0).
    m = jnp.max(jnp.where(is_pdf, h, -jnp.inf), axis=1, keepdims=True)
    z = jnp.where(is_pdf, h - m, jnp.where(is_hyp, jnp.minimum(-h, 60.0), 0.0))
    e = jnp.exp(z)

    denom = jnp.sum(jnp.where(is_pdf, e, 0.0), axis=1, keepdims=True)
    soft = e * _recip(denom)                   # softmax on pdf lanes
    hyp = _recip(1.0 + e)                      # sigmoid(h) on the hyp lane

    out_ref[...] = jnp.where(is_pdf, soft, jnp.where(is_hyp, hyp, 0.0))


def pack_params(params, input_dim, dtype=jnp.float32):
    """Pack all PyTorch-layout weights/biases into one zero-padded (rows, 128) slab."""
    h1 = params["w_in"].shape[0]
    h2 = params["w_hid"].shape[0]
    npdf = params["w_out"].shape[0]
    assert h1 <= LANES and h2 <= LANES and npdf + 1 <= LANES
    # torch module applies hyp (Linear(h1_dim, 1)) to l_2 -> requires h1 == h2.
    assert params["w_hyp"].shape[1] == h2, "hyp-on-l_2 requires h1_dim == h2_dim"

    in_rows = _round_up(input_dim, 8)

    w1 = jnp.zeros((in_rows, LANES), jnp.float32)
    w1 = w1.at[:input_dim, :h1].set(params["w_in"].T.astype(jnp.float32))

    w2 = jnp.zeros((LANES, LANES), jnp.float32)
    w2 = w2.at[:h1, :h2].set(params["w_hid"].T.astype(jnp.float32))

    # Fused head: columns [0, npdf) = output weights, column npdf = hyp weights.
    wh = jnp.zeros((LANES, LANES), jnp.float32)
    wh = wh.at[:h2, :npdf].set(params["w_out"].T.astype(jnp.float32))
    wh = wh.at[:h2, npdf].set(params["w_hyp"][0].astype(jnp.float32))

    bias = jnp.zeros((8, LANES), jnp.float32)          # 8 rows keeps slab 8-aligned
    bias = bias.at[0, :h1].set(params["b_in"].astype(jnp.float32))
    bias = bias.at[1, :h2].set(params["b_hid"].astype(jnp.float32))
    bias = bias.at[2, :npdf].set(params["b_out"].astype(jnp.float32))
    bias = bias.at[2, npdf].set(params["b_hyp"][0].astype(jnp.float32))

    slab = jnp.concatenate([w1, w2, wh, bias], axis=0).astype(dtype)
    return slab, npdf


def mlp_forward(x, params, *, block_b=1024, param_dtype=jnp.float32):
    """x: (B, input_dim).  params: dict of PyTorch-layout weights.

    block_b: batch tile (>=1024 recommended for real workloads; small values
    only for grid-exercise tests).  param_dtype=jnp.bfloat16 halves param/x DMA
    bytes (matmuls in bf16, f32 accumulation + epilogue).
    """
    B, input_dim = x.shape
    slab, npdf = pack_params(params, input_dim, dtype=param_dtype)
    out_lanes = _round_up(npdf + 1, 8)          # 16 for npdf=10: [softmax|hyp|pad]

    tb = _round_up(min(block_b, _round_up(B, 8)), 8)   # batch tile, multiple of 8
    bp = _round_up(B, tb)                              # padded batch

    xk = x.astype(param_dtype)
    if bp != B:
        xk = jnp.pad(xk, ((0, bp - B), (0, 0)))        # pad batch axis only

    compiler_kwargs = {"dimension_semantics": ("parallel",)}
    if tb > 2048:
        # Large tiles: raise scoped VMEM above the 16/32 MiB defaults with
        # headroom for live (tb, 128) temporaries + double-buffered tiles,
        # capped below v7x's 64 MiB physical VMEM.
        compiler_kwargs["vmem_limit_bytes"] = min(56 << 20,
                                                  12 * 512 * tb + (8 << 20))

    out = pl.pallas_call(
        functools.partial(_mlp_kernel, npdf=npdf, input_dim=input_dim,
                          out_lanes=out_lanes),
        out_shape=jax.ShapeDtypeStruct((bp, out_lanes), jnp.float32),
        grid=(bp // tb,),
        in_specs=[
            pl.BlockSpec(slab.shape, lambda i: (0, 0)),        # params, resident
            pl.BlockSpec((tb, input_dim), lambda i: (i, 0)),   # batch tile of x
        ],
        out_specs=pl.BlockSpec((tb, out_lanes), lambda i: (i, 0)),
        compiler_params=pltpu.CompilerParams(**compiler_kwargs),
    )(slab, xk)

    w_pred = out[:B, :npdf]
    hyp = out[:B, npdf:npdf + 1]
    return w_pred, hyp


def init_params(key, input_dim, npdf, h1_dim, h2_dim):
    """Deterministic synthetic parameters (PyTorch nn.Linear layout)."""
    ks = jax.random.split(key, 8)

    def u(k, shape, fan_in):
        bound = 1.0 / jnp.sqrt(fan_in)
        return jax.random.uniform(k, shape, jnp.float32, -bound, bound)

    return {
        "w_in":  u(ks[0], (h1_dim, input_dim), input_dim),
        "b_in":  u(ks[1], (h1_dim,), input_dim),
        "w_hid": u(ks[2], (h2_dim, h1_dim), h1_dim),
        "b_hid": u(ks[3], (h2_dim,), h1_dim),
        "w_out": u(ks[4], (npdf, h2_dim), h2_dim),
        "b_out": u(ks[5], (npdf,), h2_dim),
        "w_hyp": u(ks[6], (1, h1_dim), h1_dim),   # nn.Linear(h1_dim, 1)
        "b_hyp": u(ks[7], (1,), h1_dim),
    }


def mlp_reference(x, p):
    l1 = jax.nn.sigmoid(x @ p["w_in"].T + p["b_in"])
    l2 = jax.nn.sigmoid(l1 @ p["w_hid"].T + p["b_hid"])
    w_un = l2 @ p["w_out"].T + p["b_out"]
    hyp = jax.nn.sigmoid(l2 @ p["w_hyp"].T + p["b_hyp"])
    return jax.nn.softmax(w_un, axis=1), hyp


if __name__ == "__main__":
    key = jax.random.PRNGKey(0)
    kx, kp = jax.random.split(key)

    B, input_dim, h1_dim, h2_dim = 16, 4, 32, 32   # h1_dim == h2_dim (see note above)
    x = jax.random.normal(kx, (B, input_dim), jnp.float32)
    params = init_params(kp, input_dim, NPDF, h1_dim, h2_dim)

    # block_b=8 only to exercise a multi-step parallel grid at this tiny B;
    # production callers keep the default block_b (>=1024).
    w_pred, hyp = mlp_forward(x, params, block_b=8)
    jax.block_until_ready((w_pred, hyp))

    w_ref, h_ref = mlp_reference(x, params)
    assert w_pred.shape == (B, NPDF) and hyp.shape == (B, 1)
    assert jnp.allclose(w_pred, w_ref, atol=1e-5, rtol=1e-5)
    assert jnp.allclose(hyp, h_ref, atol=1e-5, rtol=1e-5)
    assert jnp.allclose(jnp.sum(w_pred, axis=1), 1.0, atol=1e-5)

    # bf16-matmul path (halves param/x DMA bytes); tolerance loosened by design.
    w_bf, h_bf = mlp_forward(x, params, block_b=8, param_dtype=jnp.bfloat16)
    jax.block_until_ready((w_bf, h_bf))
    assert jnp.allclose(w_bf, w_ref, atol=3e-2, rtol=3e-2)
    assert jnp.allclose(h_bf, h_ref, atol=3e-2, rtol=3e-2)

    print("KERNEL_OK")
</pallas_src>

<mosaic_0001>
module attributes {stable_mosaic.version = 11 : i64} {
  func.func @_mlp_kernel(%arg0: i32, %arg1: memref<272x128xf32, #tpu.memory_space<vmem>>, %arg2: memref<8x4xf32, #tpu.memory_space<vmem>>, %arg3: memref<8x16xf32, #tpu.memory_space<vmem>>) attributes {dimension_semantics = [#tpu.dimension_semantics<parallel>], iteration_bounds = array<i64: 2>, scalar_prefetch = 0 : i64, scratch_operands = 0 : i64, tpu.core_type = #tpu.core_type<tc>, window_params = [{pipeline_mode = #tpu.pipeline_mode<synchronous>, transform_indices = @transform_0, window_bounds = array<i64: 272, 128>}, {transform_indices = @transform_1, window_bounds = array<i64: 8, 4>}, {transform_indices = @transform_2, window_bounds = array<i64: 8, 16>}]} {
    %c0 = arith.constant 0 : index
    %c0_0 = arith.constant 0 : index
    %0 = vector.load %arg2[%c0, %c0_0] : memref<8x4xf32, #tpu.memory_space<vmem>>, vector<8x4xf32>
    %c0_1 = arith.constant 0 : index
    %c0_2 = arith.constant 0 : index
    %1 = vector.load %arg1[%c0_1, %c0_2] : memref<272x128xf32, #tpu.memory_space<vmem>>, vector<4x128xf32>
    %c8 = arith.constant 8 : index
    %c0_3 = arith.constant 0 : index
    %2 = vector.load %arg1[%c8, %c0_3] : memref<272x128xf32, #tpu.memory_space<vmem>>, vector<128x128xf32>
    %c136 = arith.constant 136 : index
    %c0_4 = arith.constant 0 : index
    %3 = vector.load %arg1[%c136, %c0_4] : memref<272x128xf32, #tpu.memory_space<vmem>>, vector<128x128xf32>
    %c264 = arith.constant 264 : index
    %c0_5 = arith.constant 0 : index
    %4 = vector.load %arg1[%c264, %c0_5] : memref<272x128xf32, #tpu.memory_space<vmem>>, vector<1x128xf32>
    %c265 = arith.constant 265 : index
    %c0_6 = arith.constant 0 : index
    %5 = vector.load %arg1[%c265, %c0_6] : memref<272x128xf32, #tpu.memory_space<vmem>>, vector<1x128xf32>
    %c266 = arith.constant 266 : index
    %c0_7 = arith.constant 0 : index
    %6 = vector.load %arg1[%c266, %c0_7] : memref<272x128xf32, #tpu.memory_space<vmem>>, vector<1x128xf32>
    %cst = arith.constant dense<0.000000e+00> : vector<8x128xf32>
    %7 = tpu.matmul %0, %1, %cst {dimension_numbers = #tpu.dot_dimension_numbers<[1], [0], [0], [1], [0, 0, 1, 1], [], []>} : vector<8x4xf32>, vector<4x128xf32>, vector<8x128xf32> -> vector<8x128xf32>
    %8 = vector.broadcast %4 : vector<1x128xf32> to vector<8x128xf32>
    %9 = arith.addf %7, %8 : vector<8x128xf32>
    %10 = arith.negf %9 : vector<8x128xf32>
    %11 = math.exp %10 : vector<8x128xf32>
    %cst_8 = arith.constant 1.000000e+00 : f32
    %12 = vector.broadcast %cst_8 : f32 to vector<8x128xf32>
    %13 = arith.addf %12, %11 : vector<8x128xf32>
    %14 = arith.divf %12, %13 : vector<8x128xf32>
    %cst_9 = arith.constant dense<0.000000e+00> : vector<8x128xf32>
    %15 = tpu.matmul %14, %2, %cst_9 {dimension_numbers = #tpu.dot_dimension_numbers<[1], [0], [0], [1], [0, 0, 1, 1], [], []>} : vector<8x128xf32>, vector<128x128xf32>, vector<8x128xf32> -> vector<8x128xf32>
    %16 = vector.broadcast %5 : vector<1x128xf32> to vector<8x128xf32>
    %17 = arith.addf %15, %16 : vector<8x128xf32>
    %18 = arith.negf %17 : vector<8x128xf32>
    %19 = math.exp %18 : vector<8x128xf32>
    %cst_10 = arith.constant 1.000000e+00 : f32
    %20 = vector.broadcast %cst_10 : f32 to vector<8x128xf32>
    %21 = arith.addf %20, %19 : vector<8x128xf32>
    %22 = arith.divf %20, %21 : vector<8x128xf32>
    %cst_11 = arith.constant dense<0.000000e+00> : vector<8x128xf32>
    %23 = tpu.matmul %22, %3, %cst_11 {dimension_numbers = #tpu.dot_dimension_numbers<[1], [0], [0], [1], [0, 0, 1, 1], [], []>} : vector<8x128xf32>, vector<128x128xf32>, vector<8x128xf32> -> vector<8x128xf32>
    %24 = vector.broadcast %6 : vector<1x128xf32> to vector<8x128xf32>
    %25 = arith.addf %23, %24 : vector<8x128xf32>
    %26 = vector.extract_strided_slice %25 {offsets = [0, 0], sizes = [8, 16], strides = [1, 1]} : vector<8x128xf32> to vector<8x16xf32>
    %27 = tpu.iota {dimensions = array<i32: 1>} : vector<8x16xi32>
    %c10_i32 = arith.constant 10 : i32
    %28 = vector.broadcast %c10_i32 : i32 to vector<8x16xi32>
    %29 = arith.cmpi slt, %27, %28 : vector<8x16xi32>
    %c10_i32_12 = arith.constant 10 : i32
    %30 = vector.broadcast %c10_i32_12 : i32 to vector<8x16xi32>
    %31 = arith.cmpi eq, %27, %30 : vector<8x16xi32>
    %cst_13 = arith.constant 0xFF800000 : f32
    %32 = vector.broadcast %cst_13 : f32 to vector<8x16xf32>
    %33 = arith.select %29, %26, %32 : vector<8x16xi1>, vector<8x16xf32>
    %cst_14 = arith.constant dense<0xFF800000> : vector<8xf32>
    %34 = vector.multi_reduction <maximumf>, %33, %cst_14 [1] : vector<8x16xf32> to vector<8xf32>
    %35 = vector.shape_cast %34 : vector<8xf32> to vector<8x1xf32>
    %36 = vector.broadcast %35 : vector<8x1xf32> to vector<8x16xf32>
    %37 = arith.subf %26, %36 : vector<8x16xf32>
    %cst_15 = arith.constant 0.000000e+00 : f32
    %38 = vector.broadcast %cst_15 : f32 to vector<8x16xf32>
    %39 = arith.subf %38, %26 : vector<8x16xf32>
    %cst_16 = arith.constant 6.000000e+01 : f32
    %40 = vector.broadcast %cst_16 : f32 to vector<8x16xf32>
    %41 = arith.minimumf %39, %40 : vector<8x16xf32>
    %cst_17 = arith.constant 0.000000e+00 : f32
    %42 = vector.broadcast %cst_17 : f32 to vector<8x16xf32>
    %43 = arith.select %31, %41, %42 : vector<8x16xi1>, vector<8x16xf32>
    %44 = arith.select %29, %37, %43 : vector<8x16xi1>, vector<8x16xf32>
    %45 = math.exp %44 : vector<8x16xf32>
    %cst_18 = arith.constant 0.000000e+00 : f32
    %46 = vector.broadcast %cst_18 : f32 to vector<8x16xf32>
    %47 = arith.select %29, %45, %46 : vector<8x16xi1>, vector<8x16xf32>
    %cst_19 = arith.constant dense<0.000000e+00> : vector<8xf32>
    %48 = vector.multi_reduction <add>, %47, %cst_19 [1] : vector<8x16xf32> to vector<8xf32>
    %49 = vector.shape_cast %48 : vector<8xf32> to vector<8x1xf32>
    %50 = tpu.reciprocal %49 {approx = true} : vector<8x1xf32> -> vector<8x1xf32>
    %51 = arith.mulf %49, %50 : vector<8x1xf32>
    %cst_20 = arith.constant 2.000000e+00 : f32
    %52 = vector.broadcast %cst_20 : f32 to vector<8x1xf32>
    %53 = arith.subf %52, %51 : vector<8x1xf32>
    %54 = arith.mulf %50, %53 : vector<8x1xf32>
    %55 = vector.broadcast %54 : vector<8x1xf32> to vector<8x16xf32>
    %56 = arith.mulf %45, %55 : vector<8x16xf32>
    %cst_21 = arith.constant 1.000000e+00 : f32
    %57 = vector.broadcast %cst_21 : f32 to vector<8x16xf32>
    %58 = arith.addf %57, %45 : vector<8x16xf32>
    %59 = tpu.reciprocal %58 {approx = true} : vector<8x16xf32> -> vector<8x16xf32>
    %60 = arith.mulf %58, %59 : vector<8x16xf32>
    %cst_22 = arith.constant 2.000000e+00 : f32
    %61 = vector.broadcast %cst_22 : f32 to vector<8x16xf32>
    %62 = arith.subf %61, %60 : vector<8x16xf32>
    %63 = arith.mulf %59, %62 : vector<8x16xf32>
    %cst_23 = arith.constant 0.000000e+00 : f32
    %64 = vector.broadcast %cst_23 : f32 to vector<8x16xf32>
    %65 = arith.select %31, %63, %64 : vector<8x16xi1>, vector<8x16xf32>
    %66 = arith.select %29, %56, %65 : vector<8x16xi1>, vector<8x16xf32>
    %c0_24 = arith.constant 0 : index
    %c0_25 = arith.constant 0 : index
    %67 = vector.load %arg3[%c0_24, %c0_25] : memref<8x16xf32, #tpu.memory_space<vmem>>, vector<8x16xf32>
    tpu.vector_store %arg3[%c0_24, %c0_25], %66 {strides = array<i32>} : memref<8x16xf32, #tpu.memory_space<vmem>>, vector<8x16xf32>,
    return
  }
  func.func @transform_0(%arg0: i32) -> (i32, i32) {
    %c0_i32 = arith.constant 0 : i32
    %c0_i32_0 = arith.constant 0 : i32
    %c0_i32_1 = arith.constant 0 : i32
    return %c0_i32, %c0_i32_0 : i32, i32
  }
  func.func @transform_1(%arg0: i32) -> (i32, i32) {
    %c0_i32 = arith.constant 0 : i32
    %c0_i32_0 = arith.constant 0 : i32
    return %arg0, %c0_i32 : i32, i32
  }
  func.func @transform_2(%arg0: i32) -> (i32, i32) {
    %c0_i32 = arith.constant 0 : i32
    %c0_i32_0 = arith.constant 0 : i32
    return %arg0, %c0_i32 : i32, i32
  }
}

</mosaic_0001>

<bundles_post_ra>
// kernel: tpu_custom_call.1
= control target key start
LH: loop header
LB: loop body
LE: loop exit
PB: predicated region body
PF: predicated region fallthrough
CT: control target
= control target key end

     0   :  { %7 = vsyncpa [#allocation3], 0  ;;  %s727_s0 = inlined_call_operand.hbm [shape: f32[272,128], index: 0, kind: input, shape index: {}]   ;;  %s728_s1 = inlined_call_operand.vmem [shape: f32[16,4], index: 1, kind: input, shape index: {}]   ;;  %s729_s2 = inlined_call_operand.hbm [shape: f32[16,16], index: 2, kind: output, shape index: {}]  }
   0x1   :  { %8 = vsyncpa [#allocation4], 0 }
   0x2   :  { %10 = vsyncpa [#allocation4 + $0x1], 0  ;;  %s623_s9 = smov 0   ;;  %s625_s10 = smov 0  }
   0x3   :  { %s627_s11 = smov 0   ;;  %s629_s12 = smov 0  }
   0x4 LB: > { %s644_s13 = sadd.s32 4294967295, %s603_s12   ;;  %s422_s14 = sadd.s32 4294967294, %s603_s12   ;;  %s603_s12 = sphi %s629_s12, %s735_s12   ;;  %s599_s11 = sphi %s627_s11, %s734_s11   ;;  %s595_s10 = sphi %s625_s10, %s733_s10   ;;  %s591_s9 = sphi %s623_s9, %s732_s9  }
   0x5   : > { %s648_s15 = sadd.s32 1, %s603_s12   ;;  %s70_s16 = sadd.s32 1, %s599_s11 }
   0x6   : > { %s67_s17 = ssub.s32 %s603_s12, %s648_s15  ;;  %p80_p0 = scmp.ne.s32.totalorder %s599_s11, %s595_s10 }
   0x7   : > { %p68_p1 = scmp.eq.s32.totalorder %s67_s17, 0  ;;  %p81_p2 = scmp.eq.s32.totalorder %s644_s13, 1 }
   0x8   : > { %p86_p3 = scmp.ne.s32.totalorder %s595_s10, %s591_s9  ;;  %p87_p4 = scmp.eq.s32.totalorder %s422_s14, 1 }
   0x9   : > { %s659_s18 = scalar_select %p68_p1, %s599_s11, %s70_s16  }
   0xa   : > { %p661_p5 = por %p81_p2, %p80_p0  ;;  %p665_p6 = por %p87_p4, %p86_p3 }
   0xb   : > { %p423_p7 = scmp.ge.s32.totalorder %s603_s12, 1  ;;  %p94_p8 = scmp.lt.s32.totalorder %s603_s12, 3 }
   0xc   : > { %p452_p9 = scmp.eq.s32.totalorder %s644_s13, 0  ;;  %s105_s23 = sshll.u32 %s727_s0, 4  ;;  %s106_s23 = int_to_ptr.hbm [resolvable:$true] %s105_s23 }
   0xd   : > { %p95_p10 = pnand %p423_p7, %p94_p8  ;;  %s605_s24 = smov [#allocation2]  }
   0xe   : > { %s107_s25 = sshll.u32 %s605_s24, 4  ;;  %s606_s26 = smov 128   ;;  %s108_s25 = int_to_ptr.vmem [resolvable:$true] %s107_s25 }
   0xf   : > { %p444_p11 = pneg %p95_p10  ;;  %s607_s27 = smov 8  }
  0x10   : > { %130 = sbr.rel (%p95_p10) target bundleno = 742 (0x2e6), region = 28 }
  0x11   : > { %p445_p12 = pnand %p452_p9, %p444_p11 }
  0x13   : > { %447 = dma.hbm_to_vmem [thread:$0]  (!%p445_p12), %s106_s23, 4352, %s108_s25, [#allocation3], %s606_s26, %s606_s26, %s607_s27  }
  0x15   : > { %582 = dma.done.wait (%p452_p9), [#allocation3], 4352  }
  0x16   : > { %584 = vsyncadd (%p452_p9), [#allocation3], 4294962944  ;;  %p152_p13 = scmp.lt.s32.totalorder %s644_s13, 1  ;;  %vm198_vm0 = vcmask 1043456   ;;  %vm194_vm1 = vcmask 31744   ;;  %v173_v2 = vld [vmem:[#allocation2 + $0x80] sm:$0xff] }
  0x17   : > { %v157_v0 = vld [vmem:[#allocation2] sm:$0xf]  ;;  %242 = vmatpush.msra.mxu1 %v173_v2  ;;  %v172_v3 = vld [vmem:[#allocation2 + $0x78] sm:$0xff]  ;;  %v171_v4 = vld [vmem:[#allocation2 + $0x70] sm:$0xff]  ;;  %v302_v2 = vlaneseq  ;;  %vm307_vm11 = vcmask 130048   ;;  %s149_s5 = sand.u32 1, %s595_s10  }
  0x18   : > { %s153_s28 = scalar_select %p152_p13, %s644_s13, 1  ;;  %430 = vmatpush.msk.msra.mxu0 %vm198_vm0, %v157_v0  ;;  %v170_v5 = vld [vmem:[#allocation2 + $0x68] sm:$0xff]  ;;  %v169_v6 = vld [vmem:[#allocation2 + $0x60] sm:$0xff]  ;;  %v168_v7 = vld [vmem:[#allocation2 + $0x58] sm:$0xff] }
  0x19   : > { %243 = vmatpush.msra.mxu1 %v172_v3  ;;  %v167_v8 = vld [vmem:[#allocation2 + $0x50] sm:$0xff]  ;;  %v166_v9 = vld [vmem:[#allocation2 + $0x48] sm:$0xff]  ;;  %v165_v10 = vld [vmem:[#allocation2 + $0x40] sm:$0xff]  ;;  %v303_v3 = vand.u32 127, %v302_v2  ;;  %s428_s6 = sshll.u32 %s149_s5, 3  ;;  %s435_s7 = sshll.u32 %s644_s13, 3 }
  0x1a   : > { %s429_s29 = sshll.u32 %s153_s28, 3  ;;  %v164_v11 = vld [vmem:[#allocation2 + $0x38] sm:$0xff]  ;;  %v163_v12 = vld [vmem:[#allocation2 + $0x30] sm:$0xff]  ;;  %v162_v13 = vld [vmem:[#allocation2 + $0x28] sm:$0xff]  ;;  %s346_s16 = scalar_lea.hbm %s729_s2, %s435_s7 }
  0x1b   : > { %s155_s4 = scalar_lea.vmem %s728_s1, %s429_s29  ;;  %244 = vmatpush.msra.mxu1 %v171_v4  ;;  %v161_v14 = vld [vmem:[#allocation2 + $0x20] sm:$0xff]  ;;  %v160_v15 = vld [vmem:[#allocation2 + $0x18] sm:$0xff]  ;;  %v159_v16 = vld [vmem:[#allocation2 + $0x10] sm:$0xff]  ;;  %vm304_vm10 = vcmp.lt.s32.totalorder %v303_v3, 10  ;;  %vm305_vm12 = vcmp.eq.s32.totalorder %v303_v3, 10  ;;  %s151_s17 = scalar_lea.vmem [#allocation5], %s428_s6 }
  0x1c   : > { %v156_v1 = vld [vmem:[%s155_s4] sm:$0xff]  ;;  %v158_v17 = vld [vmem:[#allocation2 + $0x8] sm:$0xff]  ;;  %v188_v35 = vld [vmem:[#allocation2 + $0xf8] sm:$0xff]  ;;  %s348_s21 = sshll.u32 %s151_s17, 4  ;;  %s350_s22 = sshll.u32 %s346_s16, 4  ;;  %s349_s21 = int_to_ptr.vmem [resolvable:$true] %s348_s21  ;;  %s351_s22 = int_to_ptr.hbm [resolvable:$true] %s350_s22 }
  0x1d   : > { %431 = vmatmul.msk.f32.vlgmr.msra.gmra.mxu0 %vm194_vm1, %v156_v1  ;;  %245 = vmatpush.msra.mxu1 %v170_v5  ;;  %v490_v18 = vld [vmem:[#allocation2 + $0x108] ss:$0 sm:$0xff]  ;;  %v189_v34 = vld [vmem:[#allocation2 + $0x100] sm:$0xff]  ;;  %v187_v36 = vld [vmem:[#allocation2 + $0xf0] sm:$0xff]  ;;  %s336_s13 = scalar_lea.sflag [#allocation4], %s149_s5  ;;  %s551_s23 = sshra.s32 %s351_s22, 4  ;;  %s552_s23 = int_to_ptr.hbm [resolvable:$true] %s551_s23 }
  0x1e   : > { %282 = vmatpush.msra.mxu2 %v189_v34  ;;  %v186_v37 = vld [vmem:[#allocation2 + $0xe8] sm:$0xff]  ;;  %v185_v38 = vld [vmem:[#allocation2 + $0xe0] sm:$0xff]  ;;  %v184_v39 = vld [vmem:[#allocation2 + $0xd8] sm:$0xff]  ;;  %s553_s24 = scalar_lea.hbm %s552_s23, 8  ;;  %s557_s27 = scalar_lea.hbm %s729_s2, 16 }
  0x1f   : > { %246 = vmatpush.msra.mxu1 %v169_v6  ;;  %v183_v40 = vld [vmem:[#allocation2 + $0xd0] sm:$0xff]  ;;  %v182_v41 = vld [vmem:[#allocation2 + $0xc8] sm:$0xff]  ;;  %v181_v42 = vld [vmem:[#allocation2 + $0xc0] sm:$0xff]  ;;  %p554_p0 = scmp.ne.s32.totalorder %s552_s23, %s553_s24  ;;  %p558_p3 = scmp.lt.s32.totalorder %s552_s23, %s729_s2 }
  0x20   : > { %283 = vmatpush.msra.mxu2 %v188_v35  ;;  %v180_v43 = vld [vmem:[#allocation2 + $0xb8] sm:$0xff]  ;;  %v179_v44 = vld [vmem:[#allocation2 + $0xb0] sm:$0xff]  ;;  %v178_v45 = vld [vmem:[#allocation2 + $0xa8] sm:$0xff]  ;;  %p559_p4 = scmp.lt.s32.totalorder %s557_s27, %s553_s24 }
  0x21   : > { %247 = vmatpush.msra.mxu1 %v168_v7  ;;  %v177_v46 = vld [vmem:[#allocation2 + $0xa0] sm:$0xff]  ;;  %v176_v47 = vld [vmem:[#allocation2 + $0x98] sm:$0xff]  ;;  %v175_v48 = vld [vmem:[#allocation2 + $0x90] sm:$0xff]  ;;  %p555_p1 = pnand %p554_p0, %p661_p5 }
  0x22   : > { %284 = vmatpush.msra.mxu2 %v187_v36  ;;  %v174_v49 = vld [vmem:[#allocation2 + $0x88] sm:$0xff]  ;;  %p560_p7 = por %p559_p4, %p558_p3 }
  0x23   : > { %248 = vmatpush.msra.mxu1 %v167_v8  ;;  %v491_v50 = vld [vmem:[#allocation2 + $0x109] ss:$0 sm:$0xff]  ;;  %v492_v4 = vld [vmem:[#allocation2 + $0x10a] ss:$0 sm:$0xff]  ;;  %p556_p2 = pneg %p555_p1 }
  0x24   : > { %285 = vmatpush.msra.mxu2 %v186_v37 }
  0x25   : > { %249 = vmatpush.msra.mxu1 %v166_v9  ;;  %p561_p8 = pnand %p560_p7, %p556_p2 }
  0x26   : > { %286 = vmatpush.msra.mxu2 %v185_v38 }
  0x27   : > { %250 = vmatpush.msra.mxu1 %v165_v10 }
  0x28   : > { %287 = vmatpush.msra.mxu2 %v184_v39 }
  0x29   : > { %251 = vmatpush.msra.mxu1 %v164_v11 }
  0x2a   : > { %288 = vmatpush.msra.mxu2 %v183_v40 }
  0x2b   : > { %252 = vmatpush.msra.mxu1 %v163_v12 }
  0x2c   : > { %289 = vmatpush.msra.mxu2 %v182_v41 }
  0x2d   : > { %253 = vmatpush.msra.mxu1 %v162_v13 }
  0x2e   : > { %290 = vmatpush.msra.mxu2 %v181_v42 }
  0x2f   : > { %254 = vmatpush.msra.mxu1 %v161_v14 }
  0x30   : > { %291 = vmatpush.msra.mxu2 %v180_v43 }
  0x31   : > { %255 = vmatpush.msra.mxu1 %v160_v15 }
  0x32   : > { %292 = vmatpush.msra.mxu2 %v179_v44 }
  0x33   : > { %256 = vmatpush.msra.mxu1 %v159_v16 }
  0x34   : > { %293 = vmatpush.msra.mxu2 %v178_v45 }
  0x35   : > { %257 = vmatpush.msra.mxu1 %v158_v17 }
  0x36   : > { %294 = vmatpush.msra.mxu2 %v177_v46 }
  0x38   : > { %295 = vmatpush.msra.mxu2 %v176_v47 }
  0x3a   : > { %296 = vmatpush.msra.mxu2 %v175_v48 }
  0x3c   : > { %297 = vmatpush.msra.mxu2 %v174_v49 }
  0x9a   : > { %v219_v19 = vpop.f32.mrf.mxu0 }
  0x9b   : > { %v220_v20 = vadd.f32 %v490_v18, %v219_v19 }
  0x9d   : > { %v432_v21 = vmul.f32 -1.442695, %v220_v20 }
  0x9f   : > { %493 = vpow2.f32 %v432_v21 }
  0xa5   : > { %v494_v22 = vpop.eup %493 }
  0xa6   : > { %v225_v23 = vadd.f32 1.0, %v494_v22 }
  0xa8   : > { %495 = vrcp.f32 %v225_v23  ;;  %v237_v27 = vand.u32 2147483648, %v225_v23  ;;  %v235_v29 = vand.u32 2147483647, %v225_v23  ;;  %vm231_vm3 = vweird.f32 %v225_v23 }
  0xaa   : > { %v238_v31 = vor.u32 1.1754944e-38, %v237_v27  ;;  %vm236_vm5 = vcmp.eq.f32.partialorder %v235_v29, 8.507059e+37 }
  0xae   : > { %v496_v24 = vpop.eup %495 }
  0xaf   : > { %v227_v25 = vmul.f32 %v496_v24, %v225_v23  ;;  %vm232_vm2 = vweird.f32 %v496_v24 }
  0xb0   : > { %vm233_vm4 = vmor %vm231_vm3, %vm232_vm2 }
  0xb1   : > { %v228_v26 = vsub.f32 1.0, %v227_v25 }
  0xb3   : > { %v229_v28 = vmul.f32 %v496_v24, %v228_v26 }
  0xb5   : > { %v230_v30 = vadd.f32 %v496_v24, %v229_v28 }
  0xb7   : > { %v234_v32 = vsel %vm233_vm4, %v496_v24, %v230_v30 }
  0xb8   : > { %v239_v33 = vsel %vm236_vm5, %v238_v31, %v234_v32 }
  0xb9   : > { %258 = vmatmul.f32.vlgmr.msra.gmra.mxu1 %v239_v33 }
 0x136   : > { %v259_v51 = vpop.f32.mrf.mxu1 }
 0x137   : > { %v260_v52 = vadd.f32 %v491_v50, %v259_v51 }
 0x139   : > { %v433_v53 = vmul.f32 -1.442695, %v260_v52 }
 0x13b   : > { %497 = vpow2.f32 %v433_v53 }
 0x141   : > { %v498_v54 = vpop.eup %497 }
 0x142   : > { %v265_v55 = vadd.f32 1.0, %v498_v54 }
 0x144   : > { %499 = vrcp.f32 %v265_v55  ;;  %v277_v59 = vand.u32 2147483648, %v265_v55  ;;  %v275_v61 = vand.u32 2147483647, %v265_v55  ;;  %vm271_vm7 = vweird.f32 %v265_v55 }
 0x146   : > { %v278_v63 = vor.u32 1.1754944e-38, %v277_v59  ;;  %vm276_vm9 = vcmp.eq.f32.partialorder %v275_v61, 8.507059e+37 }
 0x14a   : > { %v500_v56 = vpop.eup %499 }
 0x14b   : > { %v267_v57 = vmul.f32 %v500_v56, %v265_v55  ;;  %vm272_vm6 = vweird.f32 %v500_v56 }
 0x14c   : > { %vm273_vm8 = vmor %vm271_vm7, %vm272_vm6 }
 0x14d   : > { %v268_v58 = vsub.f32 1.0, %v267_v57 }
 0x14f   : > { %v269_v60 = vmul.f32 %v500_v56, %v268_v58 }
 0x151   : > { %v270_v62 = vadd.f32 %v500_v56, %v269_v60 }
 0x153   : > { %v274_v0 = vsel %vm273_vm8, %v500_v56, %v270_v62 }
 0x154   : > { %v279_v1 = vsel %vm276_vm9, %v278_v63, %v274_v0 }
 0x155   : > { %298 = vmatmul.f32.vlgmr.msra.gmra.mxu2 %v279_v1 }
 0x1d8   : > { %v299_v5 = vpop.f32.mrf.mxu2 }
 0x1d9   : > { %v300_v6 = vadd.f32 %v492_v4, %v299_v5 }
 0x1db   : > { %v306_v7 = vsel %vm304_vm10, %v300_v6, -inf  ;;  %v312_v9 = vsub.f32 0.0, %v300_v6 }
 0x1dc   : > { %v308_v8 = vsel %vm307_vm11, %v306_v7, -inf }
 0x1dd   : > { %309 = vmax.xlane.f32.xlu0 %v308_v8  ;;  %v313_v10 = vmin.f32 %v312_v9, 60.0 }
 0x1df   : > { %v314_v13 = vsel %vm305_vm12, %v313_v10, 0.0 }
 0x250   : > { %v310_v11 = vpop.xlane.xlu0 %309 }
 0x251   : > { %v311_v12 = vsub.f32 %v300_v6, %v310_v11 }
 0x253   : > { %v315_v14 = vsel %vm304_vm10, %v311_v12, %v314_v13 }
 0x254   : > { %v316_v15 = vmul.f32 1.442695, %v315_v14 }
 0x256   : > { %501 = vpow2.f32 %v316_v15 }
 0x25c   : > { %v502_v16 = vpop.eup %501 }
 0x25d   : > { %v318_v17 = vsel %vm304_vm10, %v502_v16, 0.0  ;;  %v327_v19 = vadd.f32 1.0, %v502_v16 }
 0x25e   : > { %v319_v18 = vsel %vm307_vm11, %v318_v17, 0.0 }
 0x25f   : > { %320 = vadd.xlane.f32.xlu0 %v319_v18  ;;  %503 = vrcp.f32 %v327_v19 }
 0x265   : > { %v504_v20 = vpop.eup %503 }
 0x266   : > { %v329_v22 = vmul.f32 %v504_v20, %v327_v19 }
 0x268   : > { %v330_v24 = vsub.f32 2.0, %v329_v22 }
 0x26a   : > { %v331_v27 = vmul.f32 %v504_v20, %v330_v24 }
 0x26c   : > { %v332_v30 = vsel %vm305_vm12, %v331_v27, 0.0 }
 0x2d2   : > { %v321_v21 = vpop.xlane.xlu0 %320 }
 0x2d3   : > { %505 = vrcp.f32 %v321_v21 }
 0x2d9   : > { %v506_v23 = vpop.eup %505 }
 0x2da   : > { %v323_v25 = vmul.f32 %v506_v23, %v321_v21 }
 0x2dc   : > { %v324_v26 = vsub.f32 2.0, %v323_v25 }
 0x2de   : > { %v325_v28 = vmul.f32 %v506_v23, %v324_v26 }
 0x2e0   : > { %v326_v29 = vmul.f32 %v502_v16, %v325_v28 }
 0x2e2   : > { %v333_v31 = vsel %vm304_vm10, %v326_v29, %v332_v30 }
 0x2e3   : > { %334 = vst.msk [vmem:[%s151_s17] sm:$0xff] %vm307_vm11, %v333_v31 }
 0x2e4   : > { %564 = shalt.err (!%p561_p8)
}
 0x2e5   : > { %442 = dma.vmem_to_hbm [thread:$0]  (%p661_p5), %s349_s21, 128, %s351_s22, %s336_s13  }
 0x2e6 PF: > { %p454_p9 = scmp.ge.s32.totalorder %s603_s12, 2  ;;  %s362_s30 = sand.u32 1, %s591_s9  }
 0x2e7   : > { %s363_s3 = scalar_lea.sflag [#allocation4], %s362_s30 }
 0x2e8   : > { %p449_p10 = pnand %p454_p9, %p665_p6 }
 0x2ea   : > { %p450_p11 = pneg %p449_p10 }
 0x2ec   : > { %586 = dma.done.wait (%p450_p11), %s363_s3, 128  }
 0x2ed   : > { %588 = vsyncadd (%p450_p11), %s363_s3, 4294967168  ;;  %p13_p12 = scmp.ge.s32.totalorder %s648_s15, 4   ;;  %s732_s9 = smov %s595_s10 }
 0x2ee   : > { %s733_s10 = smov %s599_s11  ;;  %s734_s11 = smov %s659_s18 }
 0x2ef   : > { %s735_s12 = smov %s648_s15  ;;  %15 = sbr.rel (!%p13_p12) target bundleno = 4 (0x4), region = 68 }
 0x2f4   :  { %369 = vsyncpa [#allocation3], 1 }
 0x2f5   :  { %371 = vsyncpa [#allocation3 + $0x1], 1 }
 0x2f6   :  { %372 = vsyncpa [#allocation4], 1 }
 0x2f7   :  { %374 = vsyncpa [#allocation4 + $0x1], 1 }

</bundles_post_ra>
